<compile_context>
chip_gen: v6e
topology: v6e:2x2x1
jax: 0.10.0
libtpu: 0.0.40
codegen_flags: <defaults>
</compile_context>

<pallas_src>
import jax
import jax.numpy as jnp
from jax.experimental import pallas as pl
from jax.experimental.pallas import tpu as pltpu

STATE_SIZE = 5
ACTION_SIZE = 2
HIDDEN = 128
OUT_PAD = 8            # q output: 1 -> 8 (zero pad; sliced back to 1 in wrapper)
MAX_BATCH_TILE = 512   # batch rows per grid step (sweep 256-2048; fits VMEM on v5e/v6e/v7x)


def critic_kernel(s_ref, a_ref, w1s_ref, w1a_ref, b1_ref,
                  w2_ref, b2_ref, wq_ref, bq_ref, o_ref):
    # fc1 split along the concat boundary: no concatenated x is ever built.
    h1 = (jnp.dot(s_ref[...], w1s_ref[...], preferred_element_type=jnp.float32)
          + jnp.dot(a_ref[...], w1a_ref[...], preferred_element_type=jnp.float32)
          + b1_ref[...])
    h1 = jnp.maximum(h1, 0.0)
    h2 = jnp.dot(h1, w2_ref[...], preferred_element_type=jnp.float32) + b2_ref[...]
    h2 = jnp.maximum(h2, 0.0)
    o_ref[...] = jnp.dot(h2, wq_ref[...], preferred_element_type=jnp.float32) + bq_ref[...]


def prepare_params(params):
    """One-time, init-time weight preparation (split / pad / reshape).

    The padded q-weight columns are zero, so results are bit-identical to the
    unpadded math.
    """
    w1, b1, w2, b2, wq, bq = params
    w1 = jnp.asarray(w1, jnp.float32)
    w1s = w1[:STATE_SIZE, :]                               # (5, 128)
    w1a = w1[STATE_SIZE:STATE_SIZE + ACTION_SIZE, :]       # (2, 128)
    b1_p = jnp.asarray(b1, jnp.float32).reshape(1, HIDDEN)
    w2_p = jnp.asarray(w2, jnp.float32)                    # (128, 128)
    b2_p = jnp.asarray(b2, jnp.float32).reshape(1, HIDDEN)
    wq_p = jnp.zeros((HIDDEN, OUT_PAD), jnp.float32).at[:, :1].set(
        jnp.asarray(wq, jnp.float32).reshape(HIDDEN, 1))
    bq_p = jnp.zeros((1, OUT_PAD), jnp.float32).at[:, :1].set(
        jnp.asarray(bq, jnp.float32).reshape(1, 1))
    return (w1s, w1a, b1_p, w2_p, b2_p, wq_p, bq_p)


@jax.jit
def critic_forward(state, action, prepped):
    """state: (B, 5) f32, action: (B, 2) or (B, 1, 2) f32 -> (B, 1) f32."""
    w1s, w1a, b1_p, w2_p, b2_p, wq_p, bq_p = prepped

    state = jnp.asarray(state, jnp.float32)
    # Robust equivalent of torch.squeeze(action): never touches the batch dim
    # (jnp.squeeze with no axis would also drop batch when B == 1).
    action = jnp.asarray(action, jnp.float32).reshape(-1, ACTION_SIZE)

    B = state.shape[0]
    tb = B if B <= MAX_BATCH_TILE else MAX_BATCH_TILE
    grid = (pl.cdiv(B, tb),)

    out = pl.pallas_call(
        critic_kernel,
        out_shape=jax.ShapeDtypeStruct((B, OUT_PAD), jnp.float32),
        grid=grid,
        in_specs=[
            # batch-tiled activations
            pl.BlockSpec((tb, STATE_SIZE), lambda i: (i, 0)),
            pl.BlockSpec((tb, ACTION_SIZE), lambda i: (i, 0)),
            # weights / biases: pinned to block (0, 0) -> resident across tiles
            pl.BlockSpec((STATE_SIZE, HIDDEN), lambda i: (0, 0)),
            pl.BlockSpec((ACTION_SIZE, HIDDEN), lambda i: (0, 0)),
            pl.BlockSpec((1, HIDDEN), lambda i: (0, 0)),
            pl.BlockSpec((HIDDEN, HIDDEN), lambda i: (0, 0)),
            pl.BlockSpec((1, HIDDEN), lambda i: (0, 0)),
            pl.BlockSpec((HIDDEN, OUT_PAD), lambda i: (0, 0)),
            pl.BlockSpec((1, OUT_PAD), lambda i: (0, 0)),
        ],
        out_specs=pl.BlockSpec((tb, OUT_PAD), lambda i: (i, 0)),
        compiler_params=pltpu.CompilerParams(
            dimension_semantics=("parallel",)),
    )(state, action, w1s, w1a, b1_p, w2_p, b2_p, wq_p, bq_p)

    return out[:, :1]                                       # (B, 1)


def init_params(key):
    """nn.Linear default init: U(-1/sqrt(fan_in), 1/sqrt(fan_in))."""
    def linear(key, fan_in, fan_out):
        kw, kb = jax.random.split(key)
        bound = 1.0 / jnp.sqrt(fan_in)
        w = jax.random.uniform(kw, (fan_in, fan_out), jnp.float32, -bound, bound)
        b = jax.random.uniform(kb, (fan_out,), jnp.float32, -bound, bound)
        return w, b

    k1, k2, k3 = jax.random.split(key, 3)
    w1, b1 = linear(k1, STATE_SIZE + ACTION_SIZE, HIDDEN)
    w2, b2 = linear(k2, HIDDEN, HIDDEN)
    wq, bq = linear(k3, HIDDEN, 1)
    return (w1, b1, w2, b2, wq.reshape(HIDDEN, 1), bq.reshape(1, 1))


def critic_reference(state, action, params):
    w1, b1, w2, b2, wq, bq = params
    a = jnp.asarray(action, jnp.float32).reshape(-1, ACTION_SIZE)
    x = jnp.concatenate([state, a], axis=-1)
    h1 = jnp.maximum(x @ w1 + b1, 0.0)
    h2 = jnp.maximum(h1 @ w2 + b2, 0.0)
    return h2 @ wq + bq.reshape(1, 1)


if __name__ == "__main__":
    key = jax.random.PRNGKey(0)
    kp, ks, ka = jax.random.split(key, 3)

    raw_params = init_params(kp)
    prepped = prepare_params(raw_params)   # one-time weight prep (hoisted out of forward)

    B = 8
    state = jax.random.normal(ks, (B, STATE_SIZE), jnp.float32)
    action = jax.random.normal(ka, (B, 1, ACTION_SIZE), jnp.float32)  # squeezed inside

    q = critic_forward(state, action, prepped)
    q = jax.block_until_ready(q)

    q_ref = critic_reference(state, action, raw_params)
    assert q.shape == (B, 1)
    assert jnp.allclose(q, q_ref, atol=1e-4, rtol=1e-4), "mismatch vs JAX reference"

    print("KERNEL_OK")
</pallas_src>

<mosaic_0001>
module attributes {stable_mosaic.version = 11 : i64} {
  func.func @critic_kernel(%arg0: i32, %arg1: memref<8x5xf32, #tpu.memory_space<vmem>>, %arg2: memref<8x2xf32, #tpu.memory_space<vmem>>, %arg3: memref<5x128xf32, #tpu.memory_space<vmem>>, %arg4: memref<2x128xf32, #tpu.memory_space<vmem>>, %arg5: memref<1x128xf32, #tpu.memory_space<vmem>>, %arg6: memref<128x128xf32, #tpu.memory_space<vmem>>, %arg7: memref<1x128xf32, #tpu.memory_space<vmem>>, %arg8: memref<128x8xf32, #tpu.memory_space<vmem>>, %arg9: memref<1x8xf32, #tpu.memory_space<vmem>>, %arg10: memref<8x8xf32, #tpu.memory_space<vmem>>) attributes {dimension_semantics = [#tpu.dimension_semantics<parallel>], iteration_bounds = array<i64: 1>, scalar_prefetch = 0 : i64, scratch_operands = 0 : i64, tpu.core_type = #tpu.core_type<tc>, window_params = [{transform_indices = @transform_0, window_bounds = array<i64: 8, 5>}, {transform_indices = @transform_1, window_bounds = array<i64: 8, 2>}, {pipeline_mode = #tpu.pipeline_mode<synchronous>, transform_indices = @transform_2, window_bounds = array<i64: 5, 128>}, {pipeline_mode = #tpu.pipeline_mode<synchronous>, transform_indices = @transform_3, window_bounds = array<i64: 2, 128>}, {pipeline_mode = #tpu.pipeline_mode<synchronous>, transform_indices = @transform_4, window_bounds = array<i64: 1, 128>}, {pipeline_mode = #tpu.pipeline_mode<synchronous>, transform_indices = @transform_5, window_bounds = array<i64: 128, 128>}, {pipeline_mode = #tpu.pipeline_mode<synchronous>, transform_indices = @transform_6, window_bounds = array<i64: 1, 128>}, {pipeline_mode = #tpu.pipeline_mode<synchronous>, transform_indices = @transform_7, window_bounds = array<i64: 128, 8>}, {pipeline_mode = #tpu.pipeline_mode<synchronous>, transform_indices = @transform_8, window_bounds = array<i64: 1, 8>}, {transform_indices = @transform_9, window_bounds = array<i64: 8, 8>}]} {
    %c0 = arith.constant 0 : index
    %c0_0 = arith.constant 0 : index
    %0 = vector.load %arg1[%c0, %c0_0] : memref<8x5xf32, #tpu.memory_space<vmem>>, vector<8x5xf32>
    %c0_1 = arith.constant 0 : index
    %c0_2 = arith.constant 0 : index
    %1 = vector.load %arg3[%c0_1, %c0_2] : memref<5x128xf32, #tpu.memory_space<vmem>>, vector<5x128xf32>
    %cst = arith.constant dense<0.000000e+00> : vector<8x128xf32>
    %2 = tpu.matmul %0, %1, %cst {dimension_numbers = #tpu.dot_dimension_numbers<[1], [0], [0], [1], [0, 0, 1, 1], [], []>} : vector<8x5xf32>, vector<5x128xf32>, vector<8x128xf32> -> vector<8x128xf32>
    %c0_3 = arith.constant 0 : index
    %c0_4 = arith.constant 0 : index
    %3 = vector.load %arg2[%c0_3, %c0_4] : memref<8x2xf32, #tpu.memory_space<vmem>>, vector<8x2xf32>
    %c0_5 = arith.constant 0 : index
    %c0_6 = arith.constant 0 : index
    %4 = vector.load %arg4[%c0_5, %c0_6] : memref<2x128xf32, #tpu.memory_space<vmem>>, vector<2x128xf32>
    %cst_7 = arith.constant dense<0.000000e+00> : vector<8x128xf32>
    %5 = tpu.matmul %3, %4, %cst_7 {dimension_numbers = #tpu.dot_dimension_numbers<[1], [0], [0], [1], [0, 0, 1, 1], [], []>} : vector<8x2xf32>, vector<2x128xf32>, vector<8x128xf32> -> vector<8x128xf32>
    %6 = arith.addf %2, %5 : vector<8x128xf32>
    %c0_8 = arith.constant 0 : index
    %c0_9 = arith.constant 0 : index
    %7 = vector.load %arg5[%c0_8, %c0_9] : memref<1x128xf32, #tpu.memory_space<vmem>>, vector<1x128xf32>
    %8 = vector.broadcast %7 : vector<1x128xf32> to vector<8x128xf32>
    %9 = arith.addf %6, %8 : vector<8x128xf32>
    %cst_10 = arith.constant 0.000000e+00 : f32
    %10 = vector.broadcast %cst_10 : f32 to vector<8x128xf32>
    %11 = arith.maximumf %9, %10 : vector<8x128xf32>
    %c0_11 = arith.constant 0 : index
    %c0_12 = arith.constant 0 : index
    %12 = vector.load %arg6[%c0_11, %c0_12] : memref<128x128xf32, #tpu.memory_space<vmem>>, vector<128x128xf32>
    %cst_13 = arith.constant dense<0.000000e+00> : vector<8x128xf32>
    %13 = tpu.matmul %11, %12, %cst_13 {dimension_numbers = #tpu.dot_dimension_numbers<[1], [0], [0], [1], [0, 0, 1, 1], [], []>} : vector<8x128xf32>, vector<128x128xf32>, vector<8x128xf32> -> vector<8x128xf32>
    %c0_14 = arith.constant 0 : index
    %c0_15 = arith.constant 0 : index
    %14 = vector.load %arg7[%c0_14, %c0_15] : memref<1x128xf32, #tpu.memory_space<vmem>>, vector<1x128xf32>
    %15 = vector.broadcast %14 : vector<1x128xf32> to vector<8x128xf32>
    %16 = arith.addf %13, %15 : vector<8x128xf32>
    %cst_16 = arith.constant 0.000000e+00 : f32
    %17 = vector.broadcast %cst_16 : f32 to vector<8x128xf32>
    %18 = arith.maximumf %16, %17 : vector<8x128xf32>
    %c0_17 = arith.constant 0 : index
    %c0_18 = arith.constant 0 : index
    %19 = vector.load %arg8[%c0_17, %c0_18] : memref<128x8xf32, #tpu.memory_space<vmem>>, vector<128x8xf32>
    %cst_19 = arith.constant dense<0.000000e+00> : vector<8x8xf32>
    %20 = tpu.matmul %18, %19, %cst_19 {dimension_numbers = #tpu.dot_dimension_numbers<[1], [0], [0], [1], [0, 0, 1, 1], [], []>} : vector<8x128xf32>, vector<128x8xf32>, vector<8x8xf32> -> vector<8x8xf32>
    %c0_20 = arith.constant 0 : index
    %c0_21 = arith.constant 0 : index
    %21 = vector.load %arg9[%c0_20, %c0_21] : memref<1x8xf32, #tpu.memory_space<vmem>>, vector<1x8xf32>
    %22 = vector.broadcast %21 : vector<1x8xf32> to vector<8x8xf32>
    %23 = arith.addf %20, %22 : vector<8x8xf32>
    %c0_22 = arith.constant 0 : index
    %c0_23 = arith.constant 0 : index
    %24 = vector.load %arg10[%c0_22, %c0_23] : memref<8x8xf32, #tpu.memory_space<vmem>>, vector<8x8xf32>
    tpu.vector_store %arg10[%c0_22, %c0_23], %23 {strides = array<i32>} : memref<8x8xf32, #tpu.memory_space<vmem>>, vector<8x8xf32>,
    return
  }
  func.func @transform_0(%arg0: i32) -> (i32, i32) {
    %c0_i32 = arith.constant 0 : i32
    %c0_i32_0 = arith.constant 0 : i32
    return %arg0, %c0_i32 : i32, i32
  }
  func.func @transform_1(%arg0: i32) -> (i32, i32) {
    %c0_i32 = arith.constant 0 : i32
    %c0_i32_0 = arith.constant 0 : i32
    return %arg0, %c0_i32 : i32, i32
  }
  func.func @transform_2(%arg0: i32) -> (i32, i32) {
    %c0_i32 = arith.constant 0 : i32
    %c0_i32_0 = arith.constant 0 : i32
    %c0_i32_1 = arith.constant 0 : i32
    return %c0_i32, %c0_i32_0 : i32, i32
  }
  func.func @transform_3(%arg0: i32) -> (i32, i32) {
    %c0_i32 = arith.constant 0 : i32
    %c0_i32_0 = arith.constant 0 : i32
    %c0_i32_1 = arith.constant 0 : i32
    return %c0_i32, %c0_i32_0 : i32, i32
  }
  func.func @transform_4(%arg0: i32) -> (i32, i32) {
    %c0_i32 = arith.constant 0 : i32
    %c0_i32_0 = arith.constant 0 : i32
    %c0_i32_1 = arith.constant 0 : i32
    return %c0_i32, %c0_i32_0 : i32, i32
  }
  func.func @transform_5(%arg0: i32) -> (i32, i32) {
    %c0_i32 = arith.constant 0 : i32
    %c0_i32_0 = arith.constant 0 : i32
    %c0_i32_1 = arith.constant 0 : i32
    return %c0_i32, %c0_i32_0 : i32, i32
  }
  func.func @transform_6(%arg0: i32) -> (i32, i32) {
    %c0_i32 = arith.constant 0 : i32
    %c0_i32_0 = arith.constant 0 : i32
    %c0_i32_1 = arith.constant 0 : i32
    return %c0_i32, %c0_i32_0 : i32, i32
  }
  func.func @transform_7(%arg0: i32) -> (i32, i32) {
    %c0_i32 = arith.constant 0 : i32
    %c0_i32_0 = arith.constant 0 : i32
    %c0_i32_1 = arith.constant 0 : i32
    return %c0_i32, %c0_i32_0 : i32, i32
  }
  func.func @transform_8(%arg0: i32) -> (i32, i32) {
    %c0_i32 = arith.constant 0 : i32
    %c0_i32_0 = arith.constant 0 : i32
    %c0_i32_1 = arith.constant 0 : i32
    return %c0_i32, %c0_i32_0 : i32, i32
  }
  func.func @transform_9(%arg0: i32) -> (i32, i32) {
    %c0_i32 = arith.constant 0 : i32
    %c0_i32_0 = arith.constant 0 : i32
    return %arg0, %c0_i32 : i32, i32
  }
}

</mosaic_0001>

<bundles_post_ra>
// kernel: critic_forward.1
= control target key start
LH: loop header
LB: loop body
LE: loop exit
PB: predicated region body
PF: predicated region fallthrough
CT: control target
= control target key end

     0   :  { %vm40_vm0 = vcmask 1041408   ;;  %vm118_vm1 = vcmask 1044480   ;;  %v521_v0 = vmov 0.0   ;;  %vm36_vm2 = vcmask 15360   ;;  %s736_s3 = inlined_call_operand.vmem [shape: f32[2,128], index: 3, kind: input, shape index: {}]   ;;  %s737_s2 = inlined_call_operand.vmem [shape: f32[5,128], index: 2, kind: input, shape index: {}]   ;;  %s738_s1 = inlined_call_operand.vmem [shape: f32[8,2], index: 1, kind: input, shape index: {}]   ;;  %s739_s0 = inlined_call_operand.vmem [shape: f32[8,5], index: 0, kind: input, shape index: {}]   ;;  %s740_s5 = inlined_call_operand.vmem [shape: f32[128,128], index: 5, kind: input, shape index: {}]   ;;  %s741_s7 = inlined_call_operand.vmem [shape: f32[128,8], index: 7, kind: input, shape index: {}]   ;;  %s742_s4 = inlined_call_operand.vmem [shape: f32[1,128], index: 4, kind: input, shape index: {}]   ;;  %s743_s6 = inlined_call_operand.vmem [shape: f32[1,128], index: 6, kind: input, shape index: {}]   ;;  %s744_s8 = inlined_call_operand.vmem [shape: f32[1,8], index: 8, kind: input, shape index: {}]   ;;  %s745_s9 = inlined_call_operand.vmem [shape: f32[8,8], index: 9, kind: output, shape index: {}]  }
   0x1   :  { %439 = vmatprep.subr.mxu0 %v521_v0  ;;  %444 = vmatprep.subr.mxu1 %v521_v0  ;;  %v35_v1 = vld [vmem:[%s736_s3] sm:$0x3]  ;;  %vm522_vm3 = vmmov 0   ;;  %vm114_vm4 = vcmask 39936   ;;  %v216_v5 = vld [vmem:[%s740_s5 + $0x78] sm:$0xff]  ;;  %v215_v6 = vld [vmem:[%s740_s5 + $0x70] sm:$0xff] }
   0x2   :  { %v33_v2 = vld [vmem:[%s737_s2] sm:$0x1f]  ;;  %440 = vmatpush3.msk.msra.mxu0 %vm40_vm0, %v35_v1  ;;  %441 = vmatprep.mubr.msk.f32.mxu0 %vm522_vm3, %v521_v0  ;;  %v214_v7 = vld [vmem:[%s740_s5 + $0x68] sm:$0xff]  ;;  %v212_v9 = vld [vmem:[%s740_s5 + $0x58] sm:$0xff]  ;;  %vm388_vm5 = vcmask 64512  }
   0x3   :  { %v34_v3 = vld [vmem:[%s738_s1] sm:$0xff]  ;;  %445 = vmatpush3.msk.msra.mxu1 %vm118_vm1, %v33_v2  ;;  %446 = vmatprep.mubr.msk.f32.mxu1 %vm522_vm3, %v521_v0  ;;  %v211_v10 = vld [vmem:[%s740_s5 + $0x50] sm:$0xff]  ;;  %v210_v11 = vld [vmem:[%s740_s5 + $0x48] sm:$0xff] }
   0x4   :  { %v32_v4 = vld [vmem:[%s739_s0] sm:$0xff]  ;;  %442 = vmatmul.mubr.msk.f32.vlgmr.msra.gmra.mxu0 %vm36_vm2, %v34_v3  ;;  %449 = vmatprep.subr.mxu0 %v521_v0  ;;  %v208_v13 = vld [vmem:[%s740_s5 + $0x38] sm:$0xff]  ;;  %v207_v14 = vld [vmem:[%s740_s5 + $0x30] sm:$0xff] }
   0x5   :  { %447 = vmatmul.mubr.msk.f32.vlgmr.msra.gmra.mxu1 %vm114_vm4, %v32_v4  ;;  %481 = vmatprep.mubr.msk.f32.mxu0 %vm522_vm3, %v521_v0  ;;  %v213_v8 = vld [vmem:[%s740_s5 + $0x60] sm:$0xff]  ;;  %v206_v15 = vld [vmem:[%s740_s5 + $0x28] sm:$0xff]  ;;  %v204_v17 = vld [vmem:[%s740_s5 + $0x18] sm:$0xff] }
   0x6   :  { %450 = vmatpush3.msra.mxu0 %v216_v5  ;;  %484 = vmatprep.subr.mxu1 %v521_v0  ;;  %v209_v12 = vld [vmem:[%s740_s5 + $0x40] sm:$0xff]  ;;  %v203_v18 = vld [vmem:[%s740_s5 + $0x10] sm:$0xff]  ;;  %v202_v19 = vld [vmem:[%s740_s5 + $0x8] sm:$0xff] }
   0x7   :  { %451 = vmatprep.subr.mxu0 %v521_v0  ;;  %516 = vmatprep.mubr.msk.f32.mxu1 %vm522_vm3, %v521_v0  ;;  %v205_v16 = vld [vmem:[%s740_s5 + $0x20] sm:$0xff]  ;;  %v310_v21 = vld [vmem:[%s741_s7 + $0x78] sm:$0xff]  ;;  %v309_v22 = vld [vmem:[%s741_s7 + $0x70] sm:$0xff] }
   0x8   :  { %452 = vmatpush3.msra.mxu0 %v215_v6  ;;  %v201_v20 = vld [vmem:[%s740_s5] sm:$0xff]  ;;  %485 = vmatpush3.msra.mxu1 %v310_v21  ;;  %v308_v23 = vld [vmem:[%s741_s7 + $0x68] sm:$0xff]  ;;  %v306_v25 = vld [vmem:[%s741_s7 + $0x58] sm:$0xff] }
   0x9   :  { %453 = vmatprep.subr.mxu0 %v521_v0  ;;  %486 = vmatprep.subr.mxu1 %v521_v0  ;;  %v307_v24 = vld [vmem:[%s741_s7 + $0x60] sm:$0xff]  ;;  %v305_v26 = vld [vmem:[%s741_s7 + $0x50] sm:$0xff]  ;;  %v304_v27 = vld [vmem:[%s741_s7 + $0x48] sm:$0xff] }
   0xa   :  { %454 = vmatpush3.msra.mxu0 %v214_v7  ;;  %487 = vmatpush3.msra.mxu1 %v309_v22  ;;  %v303_v28 = vld [vmem:[%s741_s7 + $0x40] sm:$0xff]  ;;  %v302_v29 = vld [vmem:[%s741_s7 + $0x38] sm:$0xff]  ;;  %v301_v30 = vld [vmem:[%s741_s7 + $0x30] sm:$0xff] }
   0xb   :  { %455 = vmatprep.subr.mxu0 %v521_v0  ;;  %488 = vmatprep.subr.mxu1 %v521_v0  ;;  %v300_v31 = vld [vmem:[%s741_s7 + $0x28] sm:$0xff]  ;;  %v299_v32 = vld [vmem:[%s741_s7 + $0x20] sm:$0xff]  ;;  %v298_v33 = vld [vmem:[%s741_s7 + $0x18] sm:$0xff] }
   0xc   :  { %456 = vmatpush3.msra.mxu0 %v213_v8  ;;  %489 = vmatpush3.msra.mxu1 %v308_v23  ;;  %v398_v36 = vld [vmem:[%s742_s4] ss:$0 sm:$0xff]  ;;  %v297_v42 = vld [vmem:[%s741_s7 + $0x10] sm:$0xff]  ;;  %v296_v43 = vld [vmem:[%s741_s7 + $0x8] sm:$0xff] }
   0xd   :  { %457 = vmatprep.subr.mxu0 %v521_v0  ;;  %490 = vmatprep.subr.mxu1 %v521_v0  ;;  %v295_v44 = vld [vmem:[%s741_s7] sm:$0xff] }
   0xe   :  { %458 = vmatpush3.msra.mxu0 %v212_v9  ;;  %491 = vmatpush3.msra.mxu1 %v307_v24  ;;  %v399_v45 = vld [vmem:[%s743_s6] ss:$0 sm:$0xff] }
   0xf   :  { %459 = vmatprep.subr.mxu0 %v521_v0  ;;  %492 = vmatprep.subr.mxu1 %v521_v0  ;;  %v400_v50 = vld [vmem:[%s744_s8] ss:$0 sm:$0xff] }
  0x10   :  { %460 = vmatpush3.msra.mxu0 %v211_v10  ;;  %493 = vmatpush3.msra.mxu1 %v306_v25 }
  0x11   :  { %461 = vmatprep.subr.mxu0 %v521_v0  ;;  %494 = vmatprep.subr.mxu1 %v521_v0 }
  0x12   :  { %462 = vmatpush3.msra.mxu0 %v210_v11  ;;  %495 = vmatpush3.msra.mxu1 %v305_v26 }
  0x13   :  { %463 = vmatprep.subr.mxu0 %v521_v0  ;;  %496 = vmatprep.subr.mxu1 %v521_v0 }
  0x14   :  { %464 = vmatpush3.msra.mxu0 %v209_v12  ;;  %497 = vmatpush3.msra.mxu1 %v304_v27 }
  0x15   :  { %465 = vmatprep.subr.mxu0 %v521_v0  ;;  %498 = vmatprep.subr.mxu1 %v521_v0 }
  0x16   :  { %466 = vmatpush3.msra.mxu0 %v208_v13  ;;  %499 = vmatpush3.msra.mxu1 %v303_v28 }
  0x17   :  { %467 = vmatprep.subr.mxu0 %v521_v0  ;;  %500 = vmatprep.subr.mxu1 %v521_v0 }
  0x18   :  { %468 = vmatpush3.msra.mxu0 %v207_v14  ;;  %501 = vmatpush3.msra.mxu1 %v302_v29 }
  0x19   :  { %469 = vmatprep.subr.mxu0 %v521_v0  ;;  %502 = vmatprep.subr.mxu1 %v521_v0 }
  0x1a   :  { %470 = vmatpush3.msra.mxu0 %v206_v15  ;;  %503 = vmatpush3.msra.mxu1 %v301_v30 }
  0x1b   :  { %471 = vmatprep.subr.mxu0 %v521_v0  ;;  %504 = vmatprep.subr.mxu1 %v521_v0 }
  0x1c   :  { %472 = vmatpush3.msra.mxu0 %v205_v16  ;;  %505 = vmatpush3.msra.mxu1 %v300_v31 }
  0x1d   :  { %473 = vmatprep.subr.mxu0 %v521_v0  ;;  %506 = vmatprep.subr.mxu1 %v521_v0 }
  0x1e   :  { %474 = vmatpush3.msra.mxu0 %v204_v17  ;;  %507 = vmatpush3.msra.mxu1 %v299_v32 }
  0x1f   :  { %475 = vmatprep.subr.mxu0 %v521_v0  ;;  %508 = vmatprep.subr.mxu1 %v521_v0 }
  0x20   :  { %476 = vmatpush3.msra.mxu0 %v203_v18  ;;  %509 = vmatpush3.msra.mxu1 %v298_v33 }
  0x21   :  { %477 = vmatprep.subr.mxu0 %v521_v0  ;;  %510 = vmatprep.subr.mxu1 %v521_v0 }
  0x22   :  { %478 = vmatpush3.msra.mxu0 %v202_v19  ;;  %511 = vmatpush3.msra.mxu1 %v297_v42 }
  0x23   :  { %479 = vmatprep.subr.mxu0 %v521_v0  ;;  %512 = vmatprep.subr.mxu1 %v521_v0 }
  0x24   :  { %480 = vmatpush3.msra.mxu0 %v201_v20  ;;  %513 = vmatpush3.msra.mxu1 %v296_v43 }
  0x25   :  { %514 = vmatprep.subr.mxu1 %v521_v0 }
  0x26   :  { %515 = vmatpush3.msra.mxu1 %v295_v44 }
  0xc4   :  { %v110_v34 = vpop.f32.mrf.mxu0 }
  0xc5   :  { %v188_v35 = vpop.f32.mrf.mxu1 }
  0xc6   :  { %v189_v37 = vadd.f32 %v188_v35, %v110_v34  ;;  %v443_v38 = vpop.f32.mrf.mxu0 }
  0xc7   :  { %v448_v39 = vpop.f32.mrf.mxu1 }
  0xc8   :  { %v199_v40 = vadd.f32 %v398_v36, %v189_v37 }
  0xca   :  { %v200_v41 = vmax.f32 %v199_v40, 0.0 }
  0xcc   :  { %482 = vmatmul.mubr.f32.vlgmr.msra.gmra.mxu0 %v200_v41 }
 0x18c   :  { %v290_v46 = vpop.f32.mrf.mxu0 }
 0x18d   :  { %v291_v47 = vadd.f32 %v399_v45, %v290_v46 }
 0x18e   :  { %v483_v48 = vpop.f32.mrf.mxu0 }
 0x18f   :  { %v294_v49 = vmax.f32 %v291_v47, 0.0 }
 0x191   :  { %517 = vmatmul.mubr.f32.vlgmr.msra.gmra.mxu1 %v294_v49 }
 0x251   :  { %v384_v51 = vpop.f32.mrf.mxu1 }
 0x252   :  { %v385_v52 = vadd.f32 %v400_v50, %v384_v51 }
 0x253   :  { %v518_v53 = vpop.f32.mrf.mxu1 }
 0x254   :  { %389 = vst.msk [vmem:[%s745_s9] sm:$0xff] %vm388_vm5, %v385_v52 }

</bundles_post_ra>
